<compile_context>
chip_gen: v7x
topology: tpu7x:2x2x1
jax: 0.10.0
libtpu: 0.0.40
codegen_flags: <defaults>
</compile_context>

<pallas_src>
import math
from functools import partial, lru_cache

import jax
import jax.numpy as jnp
from jax.experimental import pallas as pl
from jax.experimental.pallas import tpu as pltpu


# ----------------------------- sizing helpers -------------------------------


def _round_up(x, m):
    return ((x + m - 1) // m) * m


@lru_cache(maxsize=1)
def _vmem_cap_bytes():
    try:
        return int(pltpu.get_tpu_info().vmem_capacity_bytes)
    except Exception:
        return 128 * 1024 * 1024


def _default_tile_sizes(compute_dtype):
    """Generation-aware tile defaults (v7x: 64 MiB VMEM; v5e/v6e: 128 MiB)."""
    cap = _vmem_cap_bytes()
    w_item = jnp.dtype(compute_dtype).itemsize
    if cap <= 64 * 1024 * 1024:          # v7x-class: keep working sets small
        tile_m = 256
        tile_lane = 512 if w_item <= 2 else 256
    else:                                # v5e / v6e: headroom for bigger tiles
        tile_m = 512 if w_item <= 2 else 256
        tile_lane = 512
    return tile_m, tile_lane


def _choose_tile_m(M, desired):
    """Row tile: multiple of 8 (sublane), <= desired; returns (tile_m, padded_M)."""
    tile_m = min(desired, _round_up(M, 8))
    Mp = _round_up(M, tile_m)
    return tile_m, Mp


def _choose_lane_tile(N, desired):
    """Lane-dim tile: full dim if small, else a lane-aligned (x128) divisor."""
    if N <= desired:
        return N
    t = (desired // 128) * 128
    while t >= 128:
        if N % t == 0:
            return t
        t -= 128
    return N


def _choose_seq_tile(S, desired=256):
    if S <= desired:
        return S
    t = (desired // 8) * 8
    while t >= 8:
        if S % t == 0:
            return t
        t -= 8
    return S


def _pad_rows(x2d, Mp):
    M = x2d.shape[0]
    return x2d if Mp == M else jnp.pad(x2d, ((0, Mp - M), (0, 0)))


def _compiler_params(semantics, est_vmem_bytes):
    kwargs = dict(dimension_semantics=semantics)
    if est_vmem_bytes > 12 * 1024 * 1024:
        cap = int(0.75 * _vmem_cap_bytes())   # never request all of VMEM (v7x)
        kwargs["vmem_limit_bytes"] = min(2 * est_vmem_bytes, cap)
    return pltpu.CompilerParams(**kwargs)


# ------------------- fused LayerNorm + QKV projection -----------------------


def _ln_matmul_kernel(x_ref, g_ref, b_ref, w_ref, o_ref, *, eps, compute_dtype):
    x = x_ref[...].astype(jnp.float32)
    mu = jnp.mean(x, axis=-1, keepdims=True)
    xc = x - mu
    var = jnp.mean(xc * xc, axis=-1, keepdims=True)
    xn = xc * jax.lax.rsqrt(var + eps) * g_ref[...] + b_ref[...]
    o_ref[...] = jnp.dot(
        xn.astype(compute_dtype), w_ref[...].astype(compute_dtype),
        preferred_element_type=jnp.float32).astype(o_ref.dtype)


def ln_matmul(x2d, gamma, beta, w, *, eps, compute_dtype,
              tile_m_desired, tile_n_desired):
    M, D = x2d.shape
    N = w.shape[1]
    tile_m, Mp = _choose_tile_m(M, tile_m_desired)
    tile_n = _choose_lane_tile(N, tile_n_desired)
    xp = _pad_rows(x2d, Mp)
    w_item = jnp.dtype(w.dtype).itemsize
    est_vmem = (2 * (tile_m * D * 4 + 2 * D * 4 + D * tile_n * w_item)
                + 2 * tile_m * tile_n * 4)
    out = pl.pallas_call(
        partial(_ln_matmul_kernel, eps=eps, compute_dtype=compute_dtype),
        out_shape=jax.ShapeDtypeStruct((Mp, N), x2d.dtype),
        grid_spec=pltpu.PrefetchScalarGridSpec(
            num_scalar_prefetch=0,
            grid=(Mp // tile_m, N // tile_n),
            in_specs=[
                pl.BlockSpec((tile_m, D), lambda i, n: (i, 0)),
                pl.BlockSpec((1, D), lambda i, n: (0, 0)),
                pl.BlockSpec((1, D), lambda i, n: (0, 0)),
                pl.BlockSpec((D, tile_n), lambda i, n: (0, n)),
            ],
            out_specs=pl.BlockSpec((tile_m, tile_n), lambda i, n: (i, n)),
        ),
        compiler_params=_compiler_params(("parallel", "parallel"), est_vmem),
    )(xp, gamma.reshape(1, D), beta.reshape(1, D), w)
    return out[:M]


# ------------------- flash-style multi-head attention -----------------------


def _flash_attn_kernel(mask_ref, q_ref, k_ref, v_ref, o_ref,
                       m_sc, l_sc, acc_sc, *, scale, compute_dtype, approx_recip):
    ki = pl.program_id(2)

    @pl.when(ki == 0)
    def _():
        m_sc[...] = jnp.full_like(m_sc, -jnp.inf)
        l_sc[...] = jnp.zeros_like(l_sc)
        acc_sc[...] = jnp.zeros_like(acc_sc)

    q = q_ref[0].astype(compute_dtype)                       # (tq, Dh)
    k = k_ref[0].astype(compute_dtype)                       # (tk, Dh)
    s = jax.lax.dot_general(q, k, (((1,), (1,)), ((), ())),
                            preferred_element_type=jnp.float32) * scale
    s = jnp.where(mask_ref[0] == 0, -1e9, s)

    m_prev = m_sc[...]
    m_new = jnp.maximum(m_prev, jnp.max(s, axis=-1, keepdims=True))
    alpha = jnp.exp(m_prev - m_new)
    p = jnp.exp(s - m_new)
    l_sc[...] = alpha * l_sc[...] + jnp.sum(p, axis=-1, keepdims=True)
    acc_sc[...] = alpha * acc_sc[...] + jnp.dot(
        p.astype(compute_dtype), v_ref[0].astype(compute_dtype),
        preferred_element_type=jnp.float32)
    m_sc[...] = m_new

    # TODO(synk): attention-score dropout omitted (eval-mode identity).
    @pl.when(ki == pl.num_programs(2) - 1)
    def _():
        inv = pl.reciprocal(l_sc[...], approx=approx_recip)
        o_ref[...] = (acc_sc[...] * inv)[None].astype(o_ref.dtype)


def flash_attention(q, k, v, mask3, *, num_heads, compute_dtype,
                    seq_tile_desired=256):
    """q, k, v: (B*H, S, Dh); mask3: (B, S, S). Returns (B*H, S, Dh)."""
    BH, S, Dh = q.shape
    H = num_heads
    scale = 1.0 / math.sqrt(Dh)
    tq = _choose_seq_tile(S, seq_tile_desired)
    tk = _choose_seq_tile(S, seq_tile_desired)
    approx = jnp.dtype(compute_dtype) != jnp.dtype(jnp.float32)
    est_vmem = 4 * (2 * (tq * tk + tq * Dh + 2 * tk * Dh + tq * Dh)
                    + tq * (2 + Dh))
    return pl.pallas_call(
        partial(_flash_attn_kernel, scale=scale, compute_dtype=compute_dtype,
                approx_recip=approx),
        out_shape=jax.ShapeDtypeStruct((BH, S, Dh), q.dtype),
        grid_spec=pltpu.PrefetchScalarGridSpec(
            num_scalar_prefetch=0,
            grid=(BH, S // tq, S // tk),
            in_specs=[
                pl.BlockSpec((1, tq, tk), lambda bh, qi, ki: (bh // H, qi, ki)),
                pl.BlockSpec((1, tq, Dh), lambda bh, qi, ki: (bh, qi, 0)),
                pl.BlockSpec((1, tk, Dh), lambda bh, qi, ki: (bh, ki, 0)),
                pl.BlockSpec((1, tk, Dh), lambda bh, qi, ki: (bh, ki, 0)),
            ],
            out_specs=pl.BlockSpec((1, tq, Dh), lambda bh, qi, ki: (bh, qi, 0)),
            scratch_shapes=[
                pltpu.VMEM((tq, 1), jnp.float32),     # running max
                pltpu.VMEM((tq, 1), jnp.float32),     # running denom
                pltpu.VMEM((tq, Dh), jnp.float32),    # output accumulator
            ],
        ),
        compiler_params=_compiler_params(
            ("parallel", "parallel", "arbitrary"), est_vmem),
    )(mask3, q, k, v)


# -------------- output projection + residual (N/K tiled) --------------------


def _proj_residual_kernel(a_ref, w_ref, r_ref, o_ref, acc_ref, *, compute_dtype):
    kk = pl.program_id(2)

    @pl.when(kk == 0)
    def _():
        acc_ref[...] = r_ref[...].astype(jnp.float32)   # fold residual into acc

    acc_ref[...] += jnp.dot(
        a_ref[...].astype(compute_dtype), w_ref[...].astype(compute_dtype),
        preferred_element_type=jnp.float32)

    # TODO(synk): residual-path dropout omitted (eval-mode identity).
    @pl.when(kk == pl.num_programs(2) - 1)
    def _():
        o_ref[...] = acc_ref[...].astype(o_ref.dtype)


def proj_residual(a2d, w, resid2d, *, compute_dtype,
                  tile_m_desired, tile_n_desired):
    M, D = a2d.shape
    N = w.shape[1]
    tile_m, Mp = _choose_tile_m(M, tile_m_desired)
    tile_n = _choose_lane_tile(N, tile_n_desired)
    tile_k = _choose_lane_tile(D, tile_n_desired)
    ap = _pad_rows(a2d, Mp)
    rp = _pad_rows(resid2d, Mp)
    w_item = jnp.dtype(w.dtype).itemsize
    est_vmem = (2 * (tile_m * tile_k * 4 + tile_k * tile_n * w_item
                     + tile_m * tile_n * 4)
                + 2 * tile_m * tile_n * 4 + tile_m * tile_n * 4)
    out = pl.pallas_call(
        partial(_proj_residual_kernel, compute_dtype=compute_dtype),
        out_shape=jax.ShapeDtypeStruct((Mp, N), a2d.dtype),
        grid_spec=pltpu.PrefetchScalarGridSpec(
            num_scalar_prefetch=0,
            grid=(Mp // tile_m, N // tile_n, D // tile_k),
            in_specs=[
                pl.BlockSpec((tile_m, tile_k), lambda i, n, kk: (i, kk)),
                pl.BlockSpec((tile_k, tile_n), lambda i, n, kk: (kk, n)),
                pl.BlockSpec((tile_m, tile_n), lambda i, n, kk: (i, n)),
            ],
            out_specs=pl.BlockSpec((tile_m, tile_n), lambda i, n, kk: (i, n)),
            scratch_shapes=[pltpu.VMEM((tile_m, tile_n), jnp.float32)],
        ),
        compiler_params=_compiler_params(
            ("parallel", "parallel", "arbitrary"), est_vmem),
    )(ap, w, rp)
    return out[:M]


# -------- fused LayerNorm + FFN (ff_dim-tiled) + residual --------------------


def _ln_ffn_kernel(x_ref, g_ref, b_ref, w1_ref, b1_ref, w2_ref, b2_ref,
                   o_ref, xn_sc, acc_ref, *, eps, compute_dtype):
    kk = pl.program_id(1)

    @pl.when(kk == 0)
    def _():
        x = x_ref[...].astype(jnp.float32)
        mu = jnp.mean(x, axis=-1, keepdims=True)
        xc = x - mu
        var = jnp.mean(xc * xc, axis=-1, keepdims=True)
        xn = xc * jax.lax.rsqrt(var + eps) * g_ref[...] + b_ref[...]
        xn_sc[...] = xn.astype(xn_sc.dtype)              # LN2 stashed once
        # residual (= LN input) and final bias folded into the accumulator.
        acc_ref[...] = x + b2_ref[...].astype(jnp.float32)

    h = jnp.dot(xn_sc[...], w1_ref[...].astype(compute_dtype),
                preferred_element_type=jnp.float32)
    h = jnp.maximum(h + b1_ref[...].astype(jnp.float32), 0.0)   # ReLU
    # TODO(synk): hidden dropout omitted (eval-mode identity).
    acc_ref[...] += jnp.dot(
        h.astype(compute_dtype), w2_ref[...].astype(compute_dtype),
        preferred_element_type=jnp.float32)

    @pl.when(kk == pl.num_programs(1) - 1)
    def _():
        o_ref[...] = acc_ref[...].astype(o_ref.dtype)


def ln_ffn_residual(x2d, gamma, beta, w1, b1, w2, b2, *, eps, compute_dtype,
                    tile_m_desired, tile_f_desired):
    M, D = x2d.shape
    F = w1.shape[1]
    tile_m, Mp = _choose_tile_m(M, tile_m_desired)
    tile_f = _choose_lane_tile(F, tile_f_desired)
    n_k = F // tile_f
    n_m = Mp // tile_m
    xp = _pad_rows(x2d, Mp)
    w_item = jnp.dtype(w1.dtype).itemsize
    x_item = jnp.dtype(compute_dtype).itemsize

    cost = pl.CostEstimate(
        flops=4 * Mp * D * F,
        transcendentals=0,
        # weights are re-streamed once per M tile (i outer / k inner loop).
        bytes_accessed=(4 * 2 * Mp * D                 # x in + out
                        + n_m * 2 * D * F * w_item     # w1 + w2 per M tile
                        + n_m * (F + D) * 4),          # biases per M tile
    )
    est_vmem = (2 * (tile_m * D * 4 + 2 * D * 4 + D * tile_f * w_item
                     + tile_f * 4 + tile_f * D * w_item + D * 4)
                + 2 * tile_m * D * 4
                + tile_m * D * x_item + tile_m * D * 4)

    out = pl.pallas_call(
        partial(_ln_ffn_kernel, eps=eps, compute_dtype=compute_dtype),
        out_shape=jax.ShapeDtypeStruct((Mp, D), x2d.dtype),
        grid_spec=pltpu.PrefetchScalarGridSpec(
            num_scalar_prefetch=0,
            grid=(n_m, n_k),
            in_specs=[
                pl.BlockSpec((tile_m, D), lambda i, kk: (i, 0)),
                pl.BlockSpec((1, D), lambda i, kk: (0, 0)),
                pl.BlockSpec((1, D), lambda i, kk: (0, 0)),
                pl.BlockSpec((D, tile_f), lambda i, kk: (0, kk)),
                pl.BlockSpec((1, tile_f), lambda i, kk: (0, kk)),
                pl.BlockSpec((tile_f, D), lambda i, kk: (kk, 0)),
                pl.BlockSpec((1, D), lambda i, kk: (0, 0)),
            ],
            out_specs=pl.BlockSpec((tile_m, D), lambda i, kk: (i, 0)),
            scratch_shapes=[pltpu.VMEM((tile_m, D), compute_dtype),   # LN2 stash
                            pltpu.VMEM((tile_m, D), jnp.float32)],    # acc
        ),
        compiler_params=_compiler_params(("parallel", "arbitrary"), est_vmem),
        cost_estimate=cost,
    )(xp, gamma.reshape(1, D), beta.reshape(1, D), w1, b1.reshape(1, F),
      w2, b2.reshape(1, D))
    return out[:M]


# --------------------------- encoder block -----------------------------------


def prepare_params(params, compute_dtype=jnp.float32):
    """Hoist per-call work off the forward path: fuse the QKV weight and cast
    the matmul weights to the compute dtype (bf16 fast path) once."""
    wd = compute_dtype
    return dict(
        w_qkv=jnp.concatenate([params["wq"], params["wk"], params["wv"]],
                              axis=1).astype(wd),
        wo=params["wo"].astype(wd),
        w1=params["w1"].astype(wd),
        w2=params["w2"].astype(wd),
        b1=params["b1"], b2=params["b2"],
        ln1_g=params["ln1_g"], ln1_b=params["ln1_b"],
        ln2_g=params["ln2_g"], ln2_b=params["ln2_b"],
    )


def encoder_block(x, src_mask, prepared, num_heads, *,
                  compute_dtype=jnp.float32, eps=1e-5):
    B, S, D = x.shape
    H = num_heads
    Dh = D // H
    M = B * S
    tile_m_desired, tile_lane_desired = _default_tile_sizes(compute_dtype)
    x2d = x.reshape(M, D)

    # ---- sub-layer 1: pre-LN multi-head self-attention + residual ----
    qkv = ln_matmul(x2d, prepared["ln1_g"], prepared["ln1_b"], prepared["w_qkv"],
                    eps=eps, compute_dtype=compute_dtype,
                    tile_m_desired=tile_m_desired,
                    tile_n_desired=tile_lane_desired)              # (M, 3D)
    qkv = qkv.reshape(B, S, 3, H, Dh).transpose(2, 0, 3, 1, 4)     # (3,B,H,S,Dh)
    qh = qkv[0].reshape(B * H, S, Dh)
    kh = qkv[1].reshape(B * H, S, Dh)
    vh = qkv[2].reshape(B * H, S, Dh)

    if src_mask is None:
        mask3 = jnp.ones((B, S, S), jnp.int32)
    elif src_mask.ndim == 4:
        # TODO(synk): per-head masks (head dim == H) are not threaded through
        # the kernel index map; size-1 head-dim (padding/causal) masks are exact.
        mask3 = src_mask[:, 0]
    else:
        mask3 = jnp.broadcast_to(src_mask, (B, S, S))

    attn = flash_attention(qh, kh, vh, mask3, num_heads=H,
                           compute_dtype=compute_dtype)            # (B*H, S, Dh)
    attn2d = attn.reshape(B, H, S, Dh).transpose(0, 2, 1, 3).reshape(M, D)

    x2d = proj_residual(attn2d, prepared["wo"], x2d,
                        compute_dtype=compute_dtype,
                        tile_m_desired=tile_m_desired,
                        tile_n_desired=tile_lane_desired)

    # ---- sub-layer 2: pre-LN feed-forward + residual ----
    x2d = ln_ffn_residual(x2d, prepared["ln2_g"], prepared["ln2_b"],
                          prepared["w1"], prepared["b1"],
                          prepared["w2"], prepared["b2"],
                          eps=eps, compute_dtype=compute_dtype,
                          tile_m_desired=tile_m_desired,
                          tile_f_desired=tile_lane_desired)
    return x2d.reshape(B, S, D)


# ------------------------ params + pure-JAX reference ------------------------


def init_encoder_params(key, d_model, ff_dim):
    ks = jax.random.split(key, 12)

    def lin_w(k, fan_in, fan_out):
        lim = 1.0 / math.sqrt(fan_in)
        return jax.random.uniform(k, (fan_in, fan_out), jnp.float32, -lim, lim)

    def lin_b(k, fan_in, fan_out):
        lim = 1.0 / math.sqrt(fan_in)
        return jax.random.uniform(k, (fan_out,), jnp.float32, -lim, lim)

    return dict(
        wq=lin_w(ks[0], d_model, d_model),
        wk=lin_w(ks[1], d_model, d_model),
        wv=lin_w(ks[2], d_model, d_model),
        wo=lin_w(ks[3], d_model, d_model),
        w1=lin_w(ks[4], d_model, ff_dim),
        b1=lin_b(ks[5], d_model, ff_dim),
        w2=lin_w(ks[6], ff_dim, d_model),
        b2=lin_b(ks[7], ff_dim, d_model),
        ln1_g=1.0 + 0.1 * jax.random.normal(ks[8], (d_model,), jnp.float32),
        ln1_b=0.1 * jax.random.normal(ks[9], (d_model,), jnp.float32),
        ln2_g=1.0 + 0.1 * jax.random.normal(ks[10], (d_model,), jnp.float32),
        ln2_b=0.1 * jax.random.normal(ks[11], (d_model,), jnp.float32),
    )


def encoder_block_ref(x, src_mask, params, num_heads, eps=1e-5):
    B, S, D = x.shape
    H = num_heads
    Dh = D // H

    def ln(t, g, b):
        mu = jnp.mean(t, axis=-1, keepdims=True)
        var = jnp.mean((t - mu) ** 2, axis=-1, keepdims=True)
        return (t - mu) / jnp.sqrt(var + eps) * g + b

    xn = ln(x, params["ln1_g"], params["ln1_b"])
    q, k, v = xn @ params["wq"], xn @ params["wk"], xn @ params["wv"]

    def to_heads(t):
        return t.reshape(B, S, H, Dh).transpose(0, 2, 1, 3)

    qh, kh, vh = to_heads(q), to_heads(k), to_heads(v)
    s = qh @ kh.transpose(0, 1, 3, 2) / math.sqrt(Dh)
    s = jnp.where(src_mask == 0, -1e9, s)
    p = jax.nn.softmax(s, axis=-1)
    o = (p @ vh).transpose(0, 2, 1, 3).reshape(B, S, D)
    x = x + o @ params["wo"]
    xn2 = ln(x, params["ln2_g"], params["ln2_b"])
    h = jnp.maximum(xn2 @ params["w1"] + params["b1"], 0.0)
    return x + h @ params["w2"] + params["b2"]


# --------------------------------- main ---------------------------------------


if __name__ == "__main__":
    d_model, ff_dim, num_heads = 32, 64, 4
    batch, seq = 2, 8

    key = jax.random.PRNGKey(0)
    kx, kp = jax.random.split(key)
    x = jax.random.normal(kx, (batch, seq, d_model), jnp.float32)
    params = init_encoder_params(kp, d_model, ff_dim)

    # padding mask: sequence 0 attends to all 8 keys, sequence 1 to first 6
    valid_len = jnp.array([8, 6])
    key_pos = jnp.arange(seq)
    pad_mask = (key_pos[None, :] < valid_len[:, None]).astype(jnp.int32)  # (B,S)
    src_mask = jnp.broadcast_to(pad_mask[:, None, None, :], (batch, 1, seq, seq))

    ref = encoder_block_ref(x, src_mask, params, num_heads)

    # f32 path (tight tolerance).
    p32 = prepare_params(params, jnp.float32)
    out32 = jax.block_until_ready(
        encoder_block(x, src_mask, p32, num_heads, compute_dtype=jnp.float32))
    assert out32.shape == (batch, seq, d_model)
    err32 = float(jnp.max(jnp.abs(out32 - ref)))
    assert jnp.allclose(out32, ref, atol=1e-4, rtol=1e-4), err32

    # bf16 fast path (bf16 MXU operands, f32 accumulation; loose tolerance).
    pbf = prepare_params(params, jnp.bfloat16)
    outbf = jax.block_until_ready(
        encoder_block(x, src_mask, pbf, num_heads, compute_dtype=jnp.bfloat16))
    errbf = float(jnp.max(jnp.abs(outbf - ref)))
    assert jnp.allclose(outbf, ref, atol=1e-1, rtol=1e-1), errbf

    print("KERNEL_OK")
</pallas_src>

<mosaic_0001>
module attributes {stable_mosaic.version = 11 : i64} {
  func.func @_ln_matmul_kernel(%arg0: i32, %arg1: i32, %arg2: memref<16x32xf32, #tpu.memory_space<vmem>>, %arg3: memref<1x32xf32, #tpu.memory_space<vmem>>, %arg4: memref<1x32xf32, #tpu.memory_space<vmem>>, %arg5: memref<32x96xf32, #tpu.memory_space<vmem>>, %arg6: memref<16x96xf32, #tpu.memory_space<vmem>>) attributes {dimension_semantics = [#tpu.dimension_semantics<parallel>, #tpu.dimension_semantics<parallel>], iteration_bounds = array<i64: 1, 1>, scalar_prefetch = 0 : i64, scratch_operands = 0 : i64, tpu.core_type = #tpu.core_type<tc>, window_params = [{transform_indices = @transform_0, window_bounds = array<i64: 16, 32>}, {pipeline_mode = #tpu.pipeline_mode<synchronous>, transform_indices = @transform_1, window_bounds = array<i64: 1, 32>}, {pipeline_mode = #tpu.pipeline_mode<synchronous>, transform_indices = @transform_2, window_bounds = array<i64: 1, 32>}, {transform_indices = @transform_3, window_bounds = array<i64: 32, 96>}, {transform_indices = @transform_4, window_bounds = array<i64: 16, 96>}]} {
    %c0 = arith.constant 0 : index
    %c0_0 = arith.constant 0 : index
    %0 = vector.load %arg2[%c0, %c0_0] : memref<16x32xf32, #tpu.memory_space<vmem>>, vector<16x32xf32>
    %cst = arith.constant dense<0.000000e+00> : vector<16xf32>
    %1 = vector.multi_reduction <add>, %0, %cst [1] : vector<16x32xf32> to vector<16xf32>
    %2 = vector.shape_cast %1 : vector<16xf32> to vector<16x1xf32>
    %cst_1 = arith.constant 3.200000e+01 : f32
    %3 = vector.broadcast %cst_1 : f32 to vector<16x1xf32>
    %4 = arith.divf %2, %3 : vector<16x1xf32>
    %5 = vector.broadcast %4 : vector<16x1xf32> to vector<16x32xf32>
    %6 = arith.subf %0, %5 : vector<16x32xf32>
    %7 = arith.mulf %6, %6 : vector<16x32xf32>
    %cst_2 = arith.constant dense<0.000000e+00> : vector<16xf32>
    %8 = vector.multi_reduction <add>, %7, %cst_2 [1] : vector<16x32xf32> to vector<16xf32>
    %9 = vector.shape_cast %8 : vector<16xf32> to vector<16x1xf32>
    %cst_3 = arith.constant 3.200000e+01 : f32
    %10 = vector.broadcast %cst_3 : f32 to vector<16x1xf32>
    %11 = arith.divf %9, %10 : vector<16x1xf32>
    %cst_4 = arith.constant 9.99999974E-6 : f32
    %12 = vector.broadcast %cst_4 : f32 to vector<16x1xf32>
    %13 = arith.addf %11, %12 : vector<16x1xf32>
    %14 = math.rsqrt %13 : vector<16x1xf32>
    %15 = vector.broadcast %14 : vector<16x1xf32> to vector<16x32xf32>
    %16 = arith.mulf %6, %15 : vector<16x32xf32>
    %c0_5 = arith.constant 0 : index
    %c0_6 = arith.constant 0 : index
    %17 = vector.load %arg3[%c0_5, %c0_6] : memref<1x32xf32, #tpu.memory_space<vmem>>, vector<1x32xf32>
    %18 = vector.broadcast %17 : vector<1x32xf32> to vector<16x32xf32>
    %19 = arith.mulf %16, %18 : vector<16x32xf32>
    %c0_7 = arith.constant 0 : index
    %c0_8 = arith.constant 0 : index
    %20 = vector.load %arg4[%c0_7, %c0_8] : memref<1x32xf32, #tpu.memory_space<vmem>>, vector<1x32xf32>
    %21 = vector.broadcast %20 : vector<1x32xf32> to vector<16x32xf32>
    %22 = arith.addf %19, %21 : vector<16x32xf32>
    %c0_9 = arith.constant 0 : index
    %c0_10 = arith.constant 0 : index
    %23 = vector.load %arg5[%c0_9, %c0_10] : memref<32x96xf32, #tpu.memory_space<vmem>>, vector<32x96xf32>
    %cst_11 = arith.constant dense<0.000000e+00> : vector<16x96xf32>
    %24 = tpu.matmul %22, %23, %cst_11 {dimension_numbers = #tpu.dot_dimension_numbers<[1], [0], [0], [1], [0, 0, 1, 1], [], []>} : vector<16x32xf32>, vector<32x96xf32>, vector<16x96xf32> -> vector<16x96xf32>
    %c0_12 = arith.constant 0 : index
    %c0_13 = arith.constant 0 : index
    %25 = vector.load %arg6[%c0_12, %c0_13] : memref<16x96xf32, #tpu.memory_space<vmem>>, vector<16x96xf32>
    tpu.vector_store %arg6[%c0_12, %c0_13], %24 {strides = array<i32>} : memref<16x96xf32, #tpu.memory_space<vmem>>, vector<16x96xf32>,
    return
  }
  func.func @transform_0(%arg0: i32, %arg1: i32) -> (i32, i32) {
    %c0_i32 = arith.constant 0 : i32
    %c0_i32_0 = arith.constant 0 : i32
    return %arg0, %c0_i32 : i32, i32
  }
  func.func @transform_1(%arg0: i32, %arg1: i32) -> (i32, i32) {
    %c0_i32 = arith.constant 0 : i32
    %c0_i32_0 = arith.constant 0 : i32
    %c0_i32_1 = arith.constant 0 : i32
    return %c0_i32, %c0_i32_0 : i32, i32
  }
  func.func @transform_2(%arg0: i32, %arg1: i32) -> (i32, i32) {
    %c0_i32 = arith.constant 0 : i32
    %c0_i32_0 = arith.constant 0 : i32
    %c0_i32_1 = arith.constant 0 : i32
    return %c0_i32, %c0_i32_0 : i32, i32
  }
  func.func @transform_3(%arg0: i32, %arg1: i32) -> (i32, i32) {
    %c0_i32 = arith.constant 0 : i32
    %c0_i32_0 = arith.constant 0 : i32
    return %c0_i32, %arg1 : i32, i32
  }
  func.func @transform_4(%arg0: i32, %arg1: i32) -> (i32, i32) {
    %c0_i32 = arith.constant 0 : i32
    return %arg0, %arg1 : i32, i32
  }
}

</mosaic_0001>

<bundles_post_ra>
// kernel: tpu_custom_call.1
= control target key start
LH: loop header
LB: loop body
LE: loop exit
PB: predicated region body
PF: predicated region fallthrough
CT: control target
= control target key end

     0   :  { %9 = vsyncpa [#allocation3], 0  ;;  %s397_s0 = inlined_call_operand.hbm [shape: f32[16,32], index: 0, kind: input, shape index: {}]   ;;  %s398_s1 = inlined_call_operand.vmem [shape: f32[1,32], index: 1, kind: input, shape index: {}]   ;;  %s399_s2 = inlined_call_operand.vmem [shape: f32[1,32], index: 2, kind: input, shape index: {}]   ;;  %s400_s3 = inlined_call_operand.hbm [shape: f32[32,96], index: 3, kind: input, shape index: {}]   ;;  %s401_s4 = inlined_call_operand.hbm [shape: f32[16,96], index: 4, kind: output, shape index: {}]  }
   0x1   :  { %10 = vsyncpa [#allocation6], 0 }
   0x2   :  { %11 = vsyncpa [#allocation4], 0  ;;  %s310_s15 = smov [#allocation2]   ;;  %s238_s19 = scalar_lea.hbm %s397_s0, 256 }
   0x3   :  { %s17_s16 = sshll.u32 %s310_s15, 4  ;;  %p239_p0 = scmp.ne.s32.totalorder %s397_s0, %s238_s19  ;;  %s18_s16 = int_to_ptr.vmem [resolvable:$true] %s17_s16 }
   0x4   :  { %p242_p1 = scmp.lt.u32.totalorder %s238_s19, %s397_s0 }
   0x6   :  { %p244_p2 = pnand %p242_p1, %p239_p0 }
   0x8   :  { %247 = shalt.err (!%p244_p2)
}
   0x9   :  { %s248_s24 = scalar_lea.vmem %s18_s16, 256  ;;  %p253_p4 = scmp.lt.s32.totalorder %s18_s16, %s18_s16 }
   0xa   :  { %p249_p3 = scmp.ne.s32.totalorder %s18_s16, %s248_s24  ;;  %p254_p5 = scmp.lt.s32.totalorder %s248_s24, %s248_s24 }
   0xc   :  { %p255_p6 = por %p254_p5, %p253_p4 }
   0xe   :  { %p256_p7 = pnand %p255_p6, %p249_p3 }
  0x10   :  { %259 = shalt.err (!%p256_p7)
}
  0x11   :  { %s311_s25 = smov 128   ;;  %s312_s26 = smov 8  }
  0x12   :  { %23 = dma.hbm_to_vmem [thread:$0]  %s397_s0, 256, %s18_s16, [#allocation3], %s311_s25, %s311_s25, %s312_s26  }
  0x13   :  { %s313_s29 = smov [#allocation5]   ;;  %s260_s7 = scalar_lea.hbm %s400_s3, 512 }
  0x14   :  { %s33_s30 = sshll.u32 %s313_s29, 4  ;;  %p261_p8 = scmp.ne.s32.totalorder %s400_s3, %s260_s7  ;;  %s34_s30 = int_to_ptr.vmem [resolvable:$true] %s33_s30 }
  0x15   :  { %p264_p9 = scmp.lt.u32.totalorder %s260_s7, %s400_s3 }
  0x17   :  { %p266_p10 = pnand %p264_p9, %p261_p8 }
  0x19   :  { %269 = shalt.err (!%p266_p10)
}
  0x1a   :  { %s270_s12 = scalar_lea.vmem %s34_s30, 512  ;;  %p275_p12 = scmp.lt.s32.totalorder %s34_s30, %s34_s30 }
  0x1b   :  { %p271_p11 = scmp.ne.s32.totalorder %s34_s30, %s270_s12  ;;  %p276_p13 = scmp.lt.s32.totalorder %s270_s12, %s270_s12 }
  0x1d   :  { %p277_p0 = por %p276_p13, %p275_p12 }
  0x1f   :  { %p278_p1 = pnand %p277_p0, %p271_p11 }
  0x21   :  { %281 = shalt.err (!%p278_p1)
}
  0x22   :  { %39 = dma.hbm_to_vmem [thread:$0]  %s400_s3, 512, %s34_s30, [#allocation6], %s311_s25, %s311_s25, %s312_s26  }
  0x23   :  { %304 = dma.done.wait [#allocation3], 256  }
  0x24   :  { %305 = vsyncadd [#allocation3], 4294967040 }
  0x25   :  { %306 = dma.done.wait [#allocation6], 512  }
  0x26   :  { %307 = vsyncadd [#allocation6], 4294966784  ;;  %vm48_vm0 = vcmask 261120   ;;  %v46_v0 = vld [vmem:[#allocation2] sm:$0xff]  ;;  %v47_v1 = vld [vmem:[#allocation2 + $0x8] sm:$0xff]  ;;  %s314_s17 = smov [#allocation7]  }
  0x27   :  { %v49_v2 = vsel %vm48_vm0, %v46_v0, 0.0  ;;  %v52_v3 = vsel %vm48_vm0, %v47_v1, 0.0  ;;  %v94_v14 = vld [vmem:[#allocation5] sm:$0xff]  ;;  %v95_v15 = vld [vmem:[#allocation5 + $0x8] sm:$0xff]  ;;  %v96_v16 = vld [vmem:[#allocation5 + $0x10] sm:$0xff]  ;;  %s187_s18 = sshll.u32 %s314_s17, 4  ;;  %s188_s18 = int_to_ptr.vmem [resolvable:$true] %s187_s18 }
  0x28   :  { %50 = vadd.xlane.f32.xlu0 %v49_v2  ;;  %v221_v17 = vpack.c.bf16 %v95_v15, %v94_v14  ;;  %v97_v18 = vld [vmem:[#allocation5 + $0x18] sm:$0xff]  ;;  %v200_v27 = vld [vmem:[%s398_s1] ss:$0 sm:$0xff]  ;;  %vm179_vm1 = vcmask 785408   ;;  %s282_s1 = scalar_lea.vmem %s188_s18, 256  ;;  %p287_p3 = scmp.lt.s32.totalorder %s188_s18, %s188_s18 }
  0x29   :  { %v225_v19 = vpack.c.bf16 %v97_v18, %v96_v16  ;;  %v201_v29 = vld [vmem:[%s399_s2] ss:$0 sm:$0xff]  ;;  %p283_p2 = scmp.ne.s32.totalorder %s188_s18, %s282_s1  ;;  %p288_p4 = scmp.lt.s32.totalorder %s282_s1, %s282_s1 }
  0x2a   :  { %222 = vmatprep.subr.bf16.mxu0 %v221_v17 }
  0x2b   :  { %224 = vmatpush3.bf16.msra.mxu0 %v221_v17  ;;  %p289_p5 = por %p288_p4, %p287_p3 }
  0x2c   :  { %53 = vadd.xlane.f32.xlu0 %v52_v3  ;;  %226 = vmatprep.subr.bf16.mxu0 %v225_v19 }
  0x2d   :  { %p290_p6 = pnand %p289_p5, %p283_p2 }
  0x2f   :  { %228 = vmatpush3.bf16.msra.mxu0 %v225_v19 }
  0xb5   :  { %v51_v4 = vpop.xlane.xlu0 %50 }
  0xb6   :  { %v56_v5 = vmul.f32 0.03125, %v51_v4 }
  0xb8   :  { %v58_v6 = vsub.f32 %v46_v0, %v56_v5 }
  0xb9   :  { %v54_v7 = vpop.xlane.xlu0 %53 }
  0xba   :  { %v57_v8 = vmul.f32 0.03125, %v54_v7  ;;  %v60_v9 = vmul.f32 %v58_v6, %v58_v6 }
  0xbc   :  { %v59_v10 = vsub.f32 %v47_v1, %v57_v8  ;;  %v62_v11 = vsel %vm48_vm0, %v60_v9, 0.0 }
  0xbd   :  { %63 = vadd.xlane.f32.xlu1 %v62_v11 }
  0xbe   :  { %v61_v12 = vmul.f32 %v59_v10, %v59_v10 }
  0xc0   :  { %v65_v13 = vsel %vm48_vm0, %v61_v12, 0.0 }
  0xc1   :  { %66 = vadd.xlane.f32.xlu1 %v65_v13 }
 0x14a   :  { %v64_v20 = vpop.xlane.xlu1 %63 }
 0x14b   :  { %v68_v21 = vmul.f32 0.03125, %v64_v20 }
 0x14d   :  { %v70_v22 = vadd.f32 1e-05, %v68_v21 }
 0x14e   :  { %v67_v23 = vpop.xlane.xlu1 %66 }
 0x14f   :  { %234 = vrsqrt.f32 %v70_v22  ;;  %v69_v24 = vmul.f32 0.03125, %v67_v23 }
 0x151   :  { %v71_v25 = vadd.f32 1e-05, %v69_v24 }
 0x153   :  { %236 = vrsqrt.f32 %v71_v25 }
 0x159   :  { %v235_v26 = vpop.eup %234 }
 0x15a   :  { %v74_v28 = vmul.f32 %v235_v26, %v58_v6 }
 0x15c   :  { %v83_v30 = vmul.f32 %v200_v27, %v74_v28 }
 0x15d   :  { %v237_v31 = vpop.eup %236 }
 0x15e   :  { %v75_v32 = vmul.f32 %v237_v31, %v59_v10  ;;  %v92_v33 = vadd.f32 %v201_v29, %v83_v30 }
 0x160   :  { %v84_v34 = vmul.f32 %v200_v27, %v75_v32  ;;  %218 = vmatprep.mubr.msk.f32.mxu0 %vm48_vm0, %v92_v33 }
 0x162   :  { %v93_v35 = vadd.f32 %v201_v29, %v84_v34 }
 0x164   :  { %219 = vmatmul.mubr.msk.f32.vlgmr.msra.gmra.mrb[0].mxu0 %vm48_vm0, %v93_v35 }
 0x237   :  { %v220_v36 = vpop.f32.mrb[0].mxu0 }
 0x238   :  { %181 = vst.msk [vmem:[#allocation7 + $0x8] sm:$0xff] %vm179_vm1, %v220_v36  ;;  %v170_v37 = vpop.f32.mrb[1].mxu0 }
 0x239   :  { %180 = vst.msk [vmem:[#allocation7] sm:$0xff] %vm179_vm1, %v170_v37 }
 0x23a   :  { %293 = shalt.err (!%p290_p6)
}
 0x23b   :  { %s294_s20 = scalar_lea.hbm %s401_s4, 256 }
 0x23c   :  { %p295_p7 = scmp.ne.s32.totalorder %s401_s4, %s294_s20  ;;  %p298_p8 = scmp.lt.u32.totalorder %s294_s20, %s401_s4 }
 0x23e   :  { %p300_p9 = pnand %p298_p8, %p295_p7 }
 0x240   :  { %303 = shalt.err (!%p300_p9)
}
 0x241   :  { %193 = dma.vmem_to_hbm [thread:$0]  %s188_s18, 256, %s401_s4, [#allocation4], %s311_s25, %s311_s25, %s312_s26  }
 0x242   :  { %308 = dma.done.wait [#allocation4], 256  }
 0x243   :  { %309 = vsyncadd [#allocation4], 4294967040 }
 0x244   :  { %197 = vsyncpa [#allocation3], 1 }
 0x245   :  { %198 = vsyncpa [#allocation6], 1 }
 0x246   :  { %199 = vsyncpa [#allocation4], 1 }

</bundles_post_ra>
